<compile_context>
chip_gen: v5e
topology: v5e:2x2
jax: 0.10.0
libtpu: 0.0.40
codegen_flags: <defaults>
</compile_context>

<pallas_src>
import jax
import jax.numpy as jnp
from jax.experimental import pallas as pl
from jax.experimental.pallas import tpu as pltpu

_LANE = 128
_SPLIT_THRESHOLD_BYTES = 1 << 20     # split single-block cases bigger than 1 MiB
_COL_CANDIDATES = (16384, 8192, 4096, 2048, 1024, 512, 256, 128)
_MAX_ROW_BYTES = 256 << 10           # keep a single row <= 256 KiB


def _copy_kernel(x_ref, o_ref):
    # Identity copy of the current (tile_rows, cols) block.
    o_ref[...] = x_ref[...]


def _resolve_size(total_elems, size):
    """Resolve a single -1 in `size` exactly like torch.Tensor.view."""
    size = list(size)
    if -1 in size:
        neg = size.index(-1)
        known = 1
        for i, s in enumerate(size):
            if i != neg:
                known *= s
        assert known > 0 and total_elems % known == 0, "invalid view size"
        size[neg] = total_elems // known
    prod = 1
    for s in size:
        prod *= s
    assert prod == total_elems, "view size incompatible with number of elements"
    return tuple(size)


def _hw_budget():
    """Generation-aware (block_cap_bytes, vmem_limit_bytes)."""
    try:
        info = pltpu.get_tpu_info()
        vmem_cap = int(getattr(info, "vmem_capacity_bytes", 64 << 20))
    except Exception:
        vmem_cap = 64 << 20  # conservative fallback
    if vmem_cap > (64 << 20):
        # v5e / v6e: 128 MiB physical VMEM -> big blocks, 64 MiB scoped limit.
        block_cap = 16 << 20
        vmem_limit = 64 << 20
    else:
        # v7x-like: 64 MiB physical VMEM per TC -> smaller blocks + headroom.
        block_cap = 8 << 20
        vmem_limit = 48 << 20
    # in + out, each double-buffered => 4 * block_cap live; keep it within limit.
    block_cap = min(block_cap, vmem_limit // 4)
    return block_cap, vmem_limit


def _choose_layout(total, itemsize, block_cap):
    """Pick a lane-dense (rows, cols) layout and a dtype-aware row tile."""
    # Lane-dense columns: widest multiple of 128 dividing the element count,
    # with a per-row byte cap so tiling stays flexible.
    cols = _LANE
    for c in _COL_CANDIDATES:
        if total % c == 0 and c * itemsize <= _MAX_ROW_BYTES:
            cols = c
            break
    rows = total // cols

    # Sub-32-bit dtypes pack 2/4 rows per sublane: row tiles should be a
    # multiple of 8 (f32), 16 (bf16/f16), 32 (int8/fp8).
    packing = max(1, 4 // max(itemsize, 1))
    sub = 8 * packing

    max_rows = max(1, block_cap // (cols * itemsize))

    if rows <= max_rows:
        tile_rows = rows
        # Split large single-block cases so grid >= 2: pipelines in/out DMAs
        # and lets v7x shard the copy across both TensorCores.
        if rows * cols * itemsize > _SPLIT_THRESHOLD_BYTES and rows >= 2 * sub:
            pieces = 4 if rows >= 4 * sub else 2
            tile_rows = -(-rows // pieces)                 # ceil div
            tile_rows = -(-tile_rows // sub) * sub         # round up to `sub`
            if tile_rows >= rows:
                tile_rows = rows
    else:
        tile_rows = max((max_rows // sub) * sub, sub)
        # Prefer an exact divisor of `rows` (no masked partial tail), but only
        # if it stays >= half the max tile; otherwise keep the max tile and
        # accept one masked tail block (avoids the tiny-divisor perf cliff).
        floor_cand = max(sub, tile_rows // 2)
        cand = tile_rows
        while cand >= floor_cand:
            if rows % cand == 0:
                tile_rows = cand
                break
            cand -= sub
    return rows, cols, tile_rows


def pallas_view(x, size):
    """Equivalent of `x.view(size)` with the element copy done in Pallas."""
    total = x.size
    out_shape = _resolve_size(total, size)

    if total == 0 or total % _LANE != 0:
        # A view is pure metadata; for ragged element counts a Pallas copy
        # would only add masked partial stores, so use the free reshape.
        # TODO(synk): true zero-copy aliasing (torch .view semantics) has no
        # kernel equivalent; the Pallas path below materializes a copy.
        return jnp.reshape(x, out_shape)

    itemsize = jnp.dtype(x.dtype).itemsize
    block_cap, vmem_limit = _hw_budget()
    rows, cols, tile_rows = _choose_layout(total, itemsize, block_cap)
    flat = jnp.reshape(x, (rows, cols))            # glue: metadata reshape
    grid = (pl.cdiv(rows, tile_rows),)

    copied = pl.pallas_call(
        _copy_kernel,
        out_shape=jax.ShapeDtypeStruct((rows, cols), x.dtype),
        grid_spec=pltpu.PrefetchScalarGridSpec(
            num_scalar_prefetch=0,
            grid=grid,
            in_specs=[pl.BlockSpec((tile_rows, cols), lambda i: (i, 0))],
            out_specs=pl.BlockSpec((tile_rows, cols), lambda i: (i, 0)),
        ),
        compiler_params=pltpu.CompilerParams(
            dimension_semantics=("parallel",),     # shards tiles across TCs on v7x
            vmem_limit_bytes=vmem_limit,
        ),
        # Same shape/dtype in and out: donate the input HBM buffer.
        input_output_aliases={0: 0},
        # Pure memory-bound identity copy: 2 * total bytes of HBM traffic.
        cost_estimate=pl.CostEstimate(
            flops=0, transcendentals=0,
            bytes_accessed=2 * rows * cols * itemsize),
    )(flat)

    return jnp.reshape(copied, out_shape)          # glue: metadata reshape


class View:
    """Mirror of the PyTorch module: stores `size`, applies it in __call__."""

    def __init__(self, size):
        self.size = size

    def __call__(self, tensor):
        return pallas_view(tensor, self.size)


if __name__ == "__main__":
    key = jax.random.PRNGKey(0)

    # Small conv-style NCHW input, consistent with View((batch, -1)) in WAE
    # (flattening conv features to (batch, -1) before the FC head).
    x = jax.random.normal(key, (2, 4, 16, 16), dtype=jnp.float32)
    ref = jnp.reshape(x, (2, 4 * 16 * 16))
    view = View((2, -1))
    out = jax.block_until_ready(view(x))
    assert out.shape == ref.shape, (out.shape, ref.shape)
    assert out.dtype == ref.dtype
    assert bool(jnp.array_equal(out, ref))

    # bf16 case: exercises dtype-aware (16-row-multiple) tiling / lane-dense cols.
    xb = jax.random.normal(key, (2, 8, 16, 32), dtype=jnp.bfloat16)
    refb = jnp.reshape(xb, (-1, 64))
    outb = jax.block_until_ready(pallas_view(xb, (-1, 64)))
    assert outb.shape == refb.shape and outb.dtype == refb.dtype
    assert bool(jnp.array_equal(outb, refb))

    # Ragged element count (not a multiple of 128) exercises the metadata path.
    xr = jax.random.normal(key, (3, 5, 7), dtype=jnp.float32)
    outr = jax.block_until_ready(pallas_view(xr, (105,)))
    assert bool(jnp.array_equal(outr, jnp.reshape(xr, (105,))))

    print("KERNEL_OK")
</pallas_src>

<mosaic_0001>
module attributes {stable_mosaic.version = 11 : i64} {
  func.func @_copy_kernel(%arg0: i32, %arg1: memref<1x2048xf32, #tpu.memory_space<vmem>>, %arg2: memref<1x2048xf32, #tpu.memory_space<vmem>>) attributes {dimension_semantics = [#tpu.dimension_semantics<parallel>], iteration_bounds = array<i64: 1>, scalar_prefetch = 0 : i64, scratch_operands = 0 : i64, tpu.core_type = #tpu.core_type<tc>, window_params = [{transform_indices = @transform_0, window_bounds = array<i64: 1, 2048>}, {transform_indices = @transform_1, window_bounds = array<i64: 1, 2048>}]} {
    %c0 = arith.constant 0 : index
    %c0_0 = arith.constant 0 : index
    %0 = vector.load %arg1[%c0, %c0_0] : memref<1x2048xf32, #tpu.memory_space<vmem>>, vector<1x2048xf32>
    %c0_1 = arith.constant 0 : index
    %c0_2 = arith.constant 0 : index
    %1 = vector.load %arg2[%c0_1, %c0_2] : memref<1x2048xf32, #tpu.memory_space<vmem>>, vector<1x2048xf32>
    tpu.vector_store %arg2[%c0_1, %c0_2], %0 {strides = array<i32>} : memref<1x2048xf32, #tpu.memory_space<vmem>>, vector<1x2048xf32>,
    return
  }
  func.func @transform_0(%arg0: i32) -> (i32, i32) {
    %c0_i32 = arith.constant 0 : i32
    %c0_i32_0 = arith.constant 0 : i32
    return %arg0, %c0_i32 : i32, i32
  }
  func.func @transform_1(%arg0: i32) -> (i32, i32) {
    %c0_i32 = arith.constant 0 : i32
    %c0_i32_0 = arith.constant 0 : i32
    return %arg0, %c0_i32 : i32, i32
  }
}

</mosaic_0001>

<bundles_post_ra>
// kernel: tpu_custom_call.1
= control target key start
LH: loop header
LB: loop body
LE: loop exit
PB: predicated region body
PF: predicated region fallthrough
CT: control target
= control target key end

     0   :  { %6 = vsyncpa [#allocation3], 0  ;;  %s116_s0 = inlined_call_operand.hbm [shape: f32[1,2048], index: 0, kind: input, shape index: {}, may-alias: {0,1}]   ;;  %s117_s1 = inlined_call_operand.hbm [shape: f32[1,2048], index: 1, kind: output, shape index: {}, may-alias: {0,1}]  }
   0x1   :  { %7 = vsyncpa [#allocation4], 0  ;;  %s13_s8 = sshll.u32 %s116_s0, 4  ;;  %s98_s9 = smov [#allocation2]   ;;  %s14_s8 = int_to_ptr.hbm [resolvable:$true] %s13_s8 }
   0x2   :  { %s15_s10 = sshll.u32 %s98_s9, 4  ;;  %s16_s10 = int_to_ptr.vmem [resolvable:$true] %s15_s10 }
   0x3   :  { %18 = dma.hbm_to_vmem [thread:$0]  %s14_s8, 256, %s16_s10, [#allocation3]  }
   0x4   :  { %94 = dma.done.wait [#allocation3], 256  }
   0x5   :  { %95 = vsyncadd [#allocation3], 4294967040  ;;  %s99_s11 = smov [#allocation5]   ;;  %s34_s15 = sshll.u32 %s117_s1, 4  ;;  %v23_v0 = vld [vmem:[#allocation2] sm:$0xff]  ;;  %v24_v1 = vld [vmem:[#allocation2 + $0x8] sm:$0xff]  ;;  %s35_s15 = int_to_ptr.hbm [resolvable:$true] %s34_s15 }
   0x6   :  { %s32_s12 = sshll.u32 %s99_s11, 4  ;;  %25 = vst [vmem:[#allocation5] sm:$0xff] %v23_v0  ;;  %s33_s12 = int_to_ptr.vmem [resolvable:$true] %s32_s12 }
   0x7   :  { %26 = vst [vmem:[#allocation5 + $0x8] sm:$0xff] %v24_v1 }
   0x8   :  { %37 = dma.vmem_to_hbm [thread:$0]  %s33_s12, 256, %s35_s15, [#allocation4]  }
   0x9   :  { %96 = dma.done.wait [#allocation4], 256  }
   0xa   :  { %97 = vsyncadd [#allocation4], 4294967040 }
   0xb   :  { %42 = vsyncpa [#allocation3], 1 }
   0xc   :  { %43 = vsyncpa [#allocation4], 1 }

</bundles_post_ra>
